<compile_context>
chip_gen: v7x
topology: tpu7x:2x2x1
jax: 0.10.0
libtpu: 0.0.40
codegen_flags: <defaults>
</compile_context>

<pallas_src>
import jax
import jax.numpy as jnp
from jax.experimental import pallas as pl
from jax.experimental.pallas import tpu as pltpu

H1_LOGICAL, H2_LOGICAL = 60, 15   # PyTorch hidden sizes
H1_PAD, H2_PAD = 64, 16           # sublane/lane friendly padded sizes


def _round_up(n, m):
    return (n + m - 1) // m * m


def _cdiv(a, b):
    return (a + b - 1) // b


def _out_pad(action_size):
    return _round_up(max(action_size, 1), 8)


def _mlp_kernel(x_ref, w1_ref, b1_ref, w2_ref, w3_ref, o_ref):
    # Layer 1: x @ W1 + b1, ReLU.  b1[:, 60] == 1 and W1[:, 60:64] == 0, so
    # h1[:, 60] is a constant ones column that carries the folded biases of
    # layers 2 and 3 through the remaining matmuls.
    h1 = jnp.dot(x_ref[...], w1_ref[...], preferred_element_type=jnp.float32)
    h1 = jnp.maximum(h1 + b1_ref[...], 0.0)

    # Layer 2: bias folded into row 60 of W2 (and the ones column propagates
    # via W2[60, 15] == 1), ReLU.
    h2 = jnp.dot(h1, w2_ref[...], preferred_element_type=jnp.float32)
    h2 = jnp.maximum(h2, 0.0)

    # Layer 3: bias folded into row 15 of W3.  (TB, OUT_PAD) store; columns
    # >= action_size are exactly zero and sliced off in the wrapper.
    out = jnp.dot(h2, w3_ref[...], preferred_element_type=jnp.float32)
    o_ref[...] = out.astype(o_ref.dtype)


def init_params(key, states_size, action_size):
    """Logical (PyTorch-shaped) params: uniform(-1/sqrt(fan_in), +) like
    nn.Linear defaults.  Weights stored as (in, out) so y = x @ W + b."""
    dims = [(states_size, H1_LOGICAL), (H1_LOGICAL, H2_LOGICAL),
            (H2_LOGICAL, action_size)]
    params = {}
    for i, (fan_in, fan_out) in enumerate(dims, start=1):
        key, kw, kb = jax.random.split(key, 3)
        bound = 1.0 / jnp.sqrt(jnp.float32(fan_in))
        params[f"w{i}"] = jax.random.uniform(
            kw, (fan_in, fan_out), jnp.float32, -bound, bound)
        params[f"b{i}"] = jax.random.uniform(
            kb, (1, fan_out), jnp.float32, -bound, bound)
    return params


def pack_params(params, states_size, action_size):
    """Pad to hardware-friendly shapes and fold b2/b3 into W2/W3 rows."""
    out_pad = _out_pad(action_size)

    w1 = jnp.zeros((states_size, H1_PAD), jnp.float32)
    w1 = w1.at[:, :H1_LOGICAL].set(params["w1"])

    b1 = jnp.zeros((1, H1_PAD), jnp.float32)
    b1 = b1.at[:, :H1_LOGICAL].set(params["b1"])
    b1 = b1.at[0, H1_LOGICAL].set(1.0)            # ones column after ReLU

    w2 = jnp.zeros((H1_PAD, H2_PAD), jnp.float32)
    w2 = w2.at[:H1_LOGICAL, :H2_LOGICAL].set(params["w2"])
    w2 = w2.at[H1_LOGICAL, :H2_LOGICAL].set(params["b2"][0])   # fold b2
    w2 = w2.at[H1_LOGICAL, H2_LOGICAL].set(1.0)   # propagate ones column

    w3 = jnp.zeros((H2_PAD, out_pad), jnp.float32)
    w3 = w3.at[:H2_LOGICAL, :action_size].set(params["w3"])
    w3 = w3.at[H2_LOGICAL, :action_size].set(params["b3"][0])  # fold b3
    return w1, b1, w2, w3


def _choose_tiling(B, block_b):
    """Pick (TB, Bp, n_tiles): 8-aligned tiles, <= block_b rows each, minimal
    pad waste, and >= 2 tiles when the batch permits (v7x dual-TC)."""
    n_tiles = max(_cdiv(B, block_b), 1)
    if B > 8 and n_tiles < 2:
        n_tiles = 2
    TB = _round_up(_cdiv(B, n_tiles), 8)
    Bp = n_tiles * TB
    return TB, Bp, n_tiles


def dqn_forward(x, packed, action_size, *, block_b=4096, use_core_parallel=False):
    """x: (B, states_size) f32.  packed: output of pack_params.

    Set use_core_parallel=True on v7x to shard batch tiles across its two
    TensorCores (CORE_PARALLEL); default PARALLEL is safe everywhere.
    """
    w1, b1, w2, w3 = packed
    B, S = x.shape
    out_pad = w3.shape[1]

    TB, Bp, n_tiles = _choose_tiling(B, block_b)
    if Bp != B:
        x = jnp.pad(x, ((0, Bp - B), (0, 0)))

    param_bytes = 4 * (w1.size + b1.size + w2.size + w3.size)
    cost = pl.CostEstimate(
        flops=2 * Bp * (S * H1_PAD + H1_PAD * H2_PAD + H2_PAD * out_pad),
        transcendentals=0,
        bytes_accessed=4 * (Bp * S + Bp * out_pad) + param_bytes,
    )

    # Scoped-VMEM budget: double-buffered streamed x / out tiles plus
    # (conservatively double-buffered) resident params, with headroom.
    tile_bytes = 4 * (2 * TB * S + 2 * TB * out_pad) + 2 * param_bytes
    vmem_limit = int(min(64 * 1024 * 1024,
                         max(4 * 1024 * 1024, 2 * tile_bytes)))

    batch_sem = pltpu.CORE_PARALLEL if use_core_parallel else pltpu.PARALLEL

    # Parameters: constant index_map -> DMA'd once, VMEM-resident across grid.
    def resident(a):
        return pl.BlockSpec(a.shape, lambda i: (0, 0))

    out = pl.pallas_call(
        _mlp_kernel,
        out_shape=jax.ShapeDtypeStruct((Bp, out_pad), jnp.float32),
        grid=(n_tiles,),
        in_specs=[
            pl.BlockSpec((TB, S), lambda i: (i, 0)),      # x: streamed tiles
            resident(w1), resident(b1), resident(w2), resident(w3),
        ],
        out_specs=pl.BlockSpec((TB, out_pad), lambda i: (i, 0)),
        compiler_params=pltpu.CompilerParams(
            dimension_semantics=(batch_sem,),
            vmem_limit_bytes=vmem_limit),
        cost_estimate=cost,
    )(x, w1, b1, w2, w3)

    return out[:B, :action_size]


def reference_forward(x, params):
    h1 = jnp.maximum(x @ params["w1"] + params["b1"], 0.0)
    h2 = jnp.maximum(h1 @ params["w2"] + params["b2"], 0.0)
    return h2 @ params["w3"] + params["b3"]


if __name__ == "__main__":
    states_size = 16
    action_size = 4

    key = jax.random.PRNGKey(0)
    key, kx1, kx2 = jax.random.split(key, 3)
    params = init_params(key, states_size, action_size)
    packed = pack_params(params, states_size, action_size)

    # Aligned batch and a ragged batch (exercises the pad + slice path).
    for batch, kx in ((64, kx1), (10, kx2)):
        x = jax.random.normal(kx, (batch, states_size), jnp.float32)
        out = jax.block_until_ready(dqn_forward(x, packed, action_size))
        ref = reference_forward(x, params)
        assert out.shape == (batch, action_size), out.shape
        assert jnp.allclose(out, ref, atol=1e-4, rtol=1e-4), \
            "mismatch vs reference"

    print("KERNEL_OK")
</pallas_src>

<mosaic_0001>
module attributes {stable_mosaic.version = 11 : i64} {
  func.func @_mlp_kernel(%arg0: i32, %arg1: memref<32x16xf32, #tpu.memory_space<vmem>>, %arg2: memref<16x64xf32, #tpu.memory_space<vmem>>, %arg3: memref<1x64xf32, #tpu.memory_space<vmem>>, %arg4: memref<64x16xf32, #tpu.memory_space<vmem>>, %arg5: memref<16x8xf32, #tpu.memory_space<vmem>>, %arg6: memref<32x8xf32, #tpu.memory_space<vmem>>) attributes {dimension_semantics = [#tpu.dimension_semantics<parallel>], iteration_bounds = array<i64: 2>, scalar_prefetch = 0 : i64, scratch_operands = 0 : i64, tpu.core_type = #tpu.core_type<tc>, window_params = [{transform_indices = @transform_0, window_bounds = array<i64: 32, 16>}, {pipeline_mode = #tpu.pipeline_mode<synchronous>, transform_indices = @transform_1, window_bounds = array<i64: 16, 64>}, {pipeline_mode = #tpu.pipeline_mode<synchronous>, transform_indices = @transform_2, window_bounds = array<i64: 1, 64>}, {pipeline_mode = #tpu.pipeline_mode<synchronous>, transform_indices = @transform_3, window_bounds = array<i64: 64, 16>}, {pipeline_mode = #tpu.pipeline_mode<synchronous>, transform_indices = @transform_4, window_bounds = array<i64: 16, 8>}, {transform_indices = @transform_5, window_bounds = array<i64: 32, 8>}]} {
    %c0 = arith.constant 0 : index
    %c0_0 = arith.constant 0 : index
    %0 = vector.load %arg1[%c0, %c0_0] : memref<32x16xf32, #tpu.memory_space<vmem>>, vector<32x16xf32>
    %c0_1 = arith.constant 0 : index
    %c0_2 = arith.constant 0 : index
    %1 = vector.load %arg2[%c0_1, %c0_2] : memref<16x64xf32, #tpu.memory_space<vmem>>, vector<16x64xf32>
    %cst = arith.constant dense<0.000000e+00> : vector<32x64xf32>
    %2 = tpu.matmul %0, %1, %cst {dimension_numbers = #tpu.dot_dimension_numbers<[1], [0], [0], [1], [0, 0, 1, 1], [], []>} : vector<32x16xf32>, vector<16x64xf32>, vector<32x64xf32> -> vector<32x64xf32>
    %c0_3 = arith.constant 0 : index
    %c0_4 = arith.constant 0 : index
    %3 = vector.load %arg3[%c0_3, %c0_4] : memref<1x64xf32, #tpu.memory_space<vmem>>, vector<1x64xf32>
    %4 = vector.broadcast %3 : vector<1x64xf32> to vector<32x64xf32>
    %5 = arith.addf %2, %4 : vector<32x64xf32>
    %cst_5 = arith.constant 0.000000e+00 : f32
    %6 = vector.broadcast %cst_5 : f32 to vector<32x64xf32>
    %7 = arith.maximumf %5, %6 : vector<32x64xf32>
    %c0_6 = arith.constant 0 : index
    %c0_7 = arith.constant 0 : index
    %8 = vector.load %arg4[%c0_6, %c0_7] : memref<64x16xf32, #tpu.memory_space<vmem>>, vector<64x16xf32>
    %cst_8 = arith.constant dense<0.000000e+00> : vector<32x16xf32>
    %9 = tpu.matmul %7, %8, %cst_8 {dimension_numbers = #tpu.dot_dimension_numbers<[1], [0], [0], [1], [0, 0, 1, 1], [], []>} : vector<32x64xf32>, vector<64x16xf32>, vector<32x16xf32> -> vector<32x16xf32>
    %cst_9 = arith.constant 0.000000e+00 : f32
    %10 = vector.broadcast %cst_9 : f32 to vector<32x16xf32>
    %11 = arith.maximumf %9, %10 : vector<32x16xf32>
    %c0_10 = arith.constant 0 : index
    %c0_11 = arith.constant 0 : index
    %12 = vector.load %arg5[%c0_10, %c0_11] : memref<16x8xf32, #tpu.memory_space<vmem>>, vector<16x8xf32>
    %cst_12 = arith.constant dense<0.000000e+00> : vector<32x8xf32>
    %13 = tpu.matmul %11, %12, %cst_12 {dimension_numbers = #tpu.dot_dimension_numbers<[1], [0], [0], [1], [0, 0, 1, 1], [], []>} : vector<32x16xf32>, vector<16x8xf32>, vector<32x8xf32> -> vector<32x8xf32>
    %c0_13 = arith.constant 0 : index
    %c0_14 = arith.constant 0 : index
    %14 = vector.load %arg6[%c0_13, %c0_14] : memref<32x8xf32, #tpu.memory_space<vmem>>, vector<32x8xf32>
    tpu.vector_store %arg6[%c0_13, %c0_14], %13 {strides = array<i32>} : memref<32x8xf32, #tpu.memory_space<vmem>>, vector<32x8xf32>,
    return
  }
  func.func @transform_0(%arg0: i32) -> (i32, i32) {
    %c0_i32 = arith.constant 0 : i32
    %c0_i32_0 = arith.constant 0 : i32
    return %arg0, %c0_i32 : i32, i32
  }
  func.func @transform_1(%arg0: i32) -> (i32, i32) {
    %c0_i32 = arith.constant 0 : i32
    %c0_i32_0 = arith.constant 0 : i32
    %c0_i32_1 = arith.constant 0 : i32
    return %c0_i32, %c0_i32_0 : i32, i32
  }
  func.func @transform_2(%arg0: i32) -> (i32, i32) {
    %c0_i32 = arith.constant 0 : i32
    %c0_i32_0 = arith.constant 0 : i32
    %c0_i32_1 = arith.constant 0 : i32
    return %c0_i32, %c0_i32_0 : i32, i32
  }
  func.func @transform_3(%arg0: i32) -> (i32, i32) {
    %c0_i32 = arith.constant 0 : i32
    %c0_i32_0 = arith.constant 0 : i32
    %c0_i32_1 = arith.constant 0 : i32
    return %c0_i32, %c0_i32_0 : i32, i32
  }
  func.func @transform_4(%arg0: i32) -> (i32, i32) {
    %c0_i32 = arith.constant 0 : i32
    %c0_i32_0 = arith.constant 0 : i32
    %c0_i32_1 = arith.constant 0 : i32
    return %c0_i32, %c0_i32_0 : i32, i32
  }
  func.func @transform_5(%arg0: i32) -> (i32, i32) {
    %c0_i32 = arith.constant 0 : i32
    %c0_i32_0 = arith.constant 0 : i32
    return %arg0, %c0_i32 : i32, i32
  }
}

</mosaic_0001>

<bundles_post_ra>
// kernel: tpu_custom_call.1
= control target key start
LH: loop header
LB: loop body
LE: loop exit
PB: predicated region body
PF: predicated region fallthrough
CT: control target
= control target key end

     0   :  { %s773_s18 = smov 0   ;;  %s844_s0 = inlined_call_operand.vmem [shape: f32[64,16], index: 0, kind: input, shape index: {}]   ;;  %s845_s1 = inlined_call_operand.vmem [shape: f32[16,64], index: 1, kind: input, shape index: {}]   ;;  %s846_s2 = inlined_call_operand.vmem [shape: f32[1,64], index: 2, kind: input, shape index: {}]   ;;  %s847_s3 = inlined_call_operand.vmem [shape: f32[64,16], index: 3, kind: input, shape index: {}]   ;;  %s848_s4 = inlined_call_operand.vmem [shape: f32[16,8], index: 4, kind: input, shape index: {}]   ;;  %s849_s5 = inlined_call_operand.vmem [shape: f32[64,8], index: 5, kind: output, shape index: {}]  }
   0x1 LB: > { %s613_s19 = sadd.s32 4294967295, %s741_s18   ;;  %p617_p0 = scmp.ge.s32.totalorder %s741_s18, 1  ;;  %s741_s18 = sphi %s773_s18, %s15_s18  }
   0x2   : > { %p188_p1 = scmp.lt.s32.totalorder %s741_s18, 3 }
   0x4   : > { %p189_p2 = pnand %p617_p0, %p188_p1 }
   0x5   : > { %v232_v0 = vld [vmem:[%s845_s1] sm:$0xff] (!%p189_p2)  ;;  %v233_v1 = vld [vmem:[%s845_s1 + $0x8] sm:$0xff] (!%p189_p2)  ;;  %s618_s24 = sshll.u32 (!%p189_p2), %s613_s19, 2  ;;  %v345_v5 = vld [vmem:[%s847_s3 + $0x10] sm:$0xff] (!%p189_p2)  ;;  %vm241_vm0 = vcmask (!%p189_p2), 130048   ;;  %vm351_vm1 = vcmask (!%p189_p2), 523264  }
   0x6   : > { %192 = sbr.rel (%p189_p2) target bundleno = 670 (0x29e), region = 40  ;;  %v343_v2 = vld [vmem:[%s847_s3] sm:$0xff] (!%p189_p2)  ;;  %v703_v3 = vpack.c.bf16 (!%p189_p2), %v233_v1, %v232_v0  ;;  %p217_p3 = scmp.lt.s32.totalorder (!%p189_p2), %s618_s24, 7  ;;  %v344_v4 = vld [vmem:[%s847_s3 + $0x8] sm:$0xff] (!%p189_p2)  ;;  %v346_v6 = vld [vmem:[%s847_s3 + $0x18] sm:$0xff] (!%p189_p2)  ;;  %vm552_vm2 = vcmask (!%p189_p2), 64512  }
   0x7   : > { %v707_v7 = vpack.c.bf16 (!%p189_p2), %v344_v4, %v343_v2  ;;  %v711_v8 = vpack.c.bf16 (!%p189_p2), %v346_v6, %v345_v5  ;;  %v347_v9 = vld [vmem:[%s847_s3 + $0x20] sm:$0xff] (!%p189_p2)  ;;  %v348_v10 = vld [vmem:[%s847_s3 + $0x28] sm:$0xff] (!%p189_p2)  ;;  %v349_v16 = vld [vmem:[%s847_s3 + $0x30] sm:$0xff] (!%p189_p2) }
   0x8   : > { %704 = vmatprep.subr.bf16.mxu0 (!%p189_p2), %v703_v3  ;;  %v715_v11 = vpack.c.bf16 (!%p189_p2), %v348_v10, %v347_v9  ;;  %v350_v17 = vld [vmem:[%s847_s3 + $0x38] sm:$0xff] (!%p189_p2)  ;;  %v453_v19 = vld [vmem:[%s848_s4] sm:$0xff] (!%p189_p2)  ;;  %v454_v20 = vld [vmem:[%s848_s4 + $0x8] sm:$0xff] (!%p189_p2) }
   0x9   : > { %706 = vmatpush3.bf16.msra.mxu0 (!%p189_p2), %v703_v3  ;;  %708 = vmatprep.subr.bf16.mxu1 (!%p189_p2), %v707_v7  ;;  %v719_v18 = vpack.c.bf16 (!%p189_p2), %v350_v17, %v349_v16  ;;  %v723_v21 = vpack.c.bf16 (!%p189_p2), %v454_v20, %v453_v19  ;;  %v622_v22 = vld [vmem:[%s846_s2] ss:$0 sm:$0xff] (!%p189_p2) }
   0xa   : > { %710 = vmatpush3.bf16.msra.mxu1 (!%p189_p2), %v707_v7 }
   0xb   : > { %712 = vmatprep.subr.bf16.mxu1 (!%p189_p2), %v711_v8  ;;  %724 = vmatprep.subr.bf16.mxu0 (!%p189_p2), %v723_v21 }
   0xd   : > { %s851_s24 = smov (!%p217_p3, %s618_s24), 7 }
   0xe   : > { %s619_s12 = sshll.u32 %s851_s24, 3  ;;  %714 = vmatpush3.bf16.msra.mxu1 %v711_v8 }
   0xf   : > { %s220_s15 = scalar_lea.vmem %s844_s0, %s619_s12  ;;  %716 = vmatprep.subr.bf16.mxu1 %v715_v11  ;;  %s226_s30 = scalar_lea.vmem %s849_s5, %s619_s12 }
  0x10   : > { %v228_v12 = vld [vmem:[%s220_s15] sm:$0xff]  ;;  %v229_v13 = vld [vmem:[%s220_s15 + $0x8] sm:$0xff]  ;;  %v230_v14 = vld [vmem:[%s220_s15 + $0x10] sm:$0xff] }
  0x11   : > { %665 = vmatprep.mubr.msk.f32.mxu0 %vm241_vm0, %v228_v12  ;;  %v231_v15 = vld [vmem:[%s220_s15 + $0x18] sm:$0xff] }
  0x12   : > { %666 = vmatmul.mubr.msk.f32.vlgmr.msra.gmra.mrb[0].mxu0 %vm241_vm0, %v229_v13  ;;  %718 = vmatpush3.bf16.msra.mxu1 %v715_v11 }
  0x13   : > { %668 = vmatprep.mubr.msk.f32.mxu0 %vm241_vm0, %v230_v14  ;;  %720 = vmatprep.subr.bf16.mxu1 %v719_v18 }
  0x14   : > { %726 = vmatpush3.bf16.msra.mxu0 %v723_v21 }
  0x16   : > { %669 = vmatmul.mubr.msk.f32.gmra.mrb[2].mxu0 %vm241_vm0, %v231_v15  ;;  %722 = vmatpush3.bf16.msra.mxu1 %v719_v18 }
  0xe5   : > { %v667_v23 = vpop.f32.mrb[0].mxu0 }
  0xe6   : > { %v326_v24 = vadd.f32 %v667_v23, %v622_v22  ;;  %v320_v25 = vpop.f32.mrb[1].mxu0 }
  0xe7   : > { %v321_v26 = vadd.f32 %v622_v22, %v320_v25 }
  0xe8   : > { %v340_v29 = vmax.f32 %v326_v24, 0.0 }
  0xe9   : > { %v339_v27 = vmax.f32 %v321_v26, 0.0  ;;  %v670_v28 = vpop.f32.mrb[2].mxu0 }
  0xea   : > { %v336_v30 = vadd.f32 %v670_v28, %v622_v22  ;;  %v330_v31 = vpop.f32.mrb[3].mxu0 }
  0xeb   : > { %v331_v32 = vadd.f32 %v622_v22, %v330_v31  ;;  %687 = vmatprep.mubr.msk.f32.mxu1 %vm351_vm1, %v339_v27 }
  0xec   : > { %688 = vmatmul.mubr.msk.f32.vlgmr.msra.gmra.mrb[0].mxu1 %vm351_vm1, %v340_v29  ;;  %v342_v34 = vmax.f32 %v336_v30, 0.0 }
  0xed   : > { %v341_v33 = vmax.f32 %v331_v32, 0.0 }
  0xef   : > { %690 = vmatprep.mubr.msk.f32.mxu1 %vm351_vm1, %v341_v33 }
  0xf0   : > { %691 = vmatmul.mubr.msk.f32.gmra.mrb[2].mxu1 %vm351_vm1, %v342_v34 }
 0x1bf   : > { %v689_v35 = vpop.f32.mrb[0].mxu1 }
 0x1c0   : > { %v430_v36 = vpop.f32.mrb[1].mxu1  ;;  %v450_v38 = vmax.f32 %v689_v35, 0.0 }
 0x1c1   : > { %v449_v37 = vmax.f32 %v430_v36, 0.0 }
 0x1c3   : > { %v692_v39 = vpop.f32.mrb[2].mxu1  ;;  %697 = vmatprep.mubr.msk.f32.mxu0 %vm241_vm0, %v449_v37 }
 0x1c4   : > { %v440_v40 = vpop.f32.mrb[3].mxu1  ;;  %698 = vmatmul.mubr.msk.f32.vlgmr.msra.gmra.mrb[4].mxu0 %vm241_vm0, %v450_v38  ;;  %v452_v42 = vmax.f32 %v692_v39, 0.0 }
 0x1c5   : > { %v451_v41 = vmax.f32 %v440_v40, 0.0 }
 0x1c7   : > { %700 = vmatprep.mubr.msk.f32.mxu0 %vm241_vm0, %v451_v41 }
 0x1c8   : > { %701 = vmatmul.mubr.msk.f32.gmra.mrb[6].mxu0 %vm241_vm0, %v452_v42 }
 0x297   : > { %v699_v43 = vpop.f32.mrb[4].mxu0 }
 0x298   : > { %v533_v44 = vpop.f32.mrb[5].mxu0  ;;  %554 = vst.msk [vmem:[%s226_s30 + $0x8] sm:$0xff] %vm552_vm2, %v699_v43 }
 0x299   : > { %553 = vst.msk [vmem:[%s226_s30] sm:$0xff] %vm552_vm2, %v533_v44 }
 0x29b   : > { %v702_v45 = vpop.f32.mrb[6].mxu0 }
 0x29c   : > { %v543_v46 = vpop.f32.mrb[7].mxu0  ;;  %556 = vst.msk [vmem:[%s226_s30 + $0x18] sm:$0xff] %vm552_vm2, %v702_v45 }
 0x29d   : > { %555 = vst.msk [vmem:[%s226_s30 + $0x10] sm:$0xff] %vm552_vm2, %v543_v46 }
 0x29e PF: > { %s15_s18 = sadd.s32 1, %s741_s18  }
 0x29f   : > { %p12_p4 = scmp.ge.s32.totalorder %s15_s18, 4  }
 0x2a1   :  { %14 = sbr.rel (!%p12_p4) target bundleno = 1 (0x1), region = 70 }

</bundles_post_ra>
